<compile_context>
chip_gen: v5e
topology: v5e:2x2
jax: 0.10.0
libtpu: 0.0.40
codegen_flags: <defaults>
</compile_context>

<pallas_src>
import functools

import jax
import jax.numpy as jnp
from jax.experimental import pallas as pl
from jax.experimental.pallas import tpu as pltpu

CIFAR100_MEAN = (0.5071, 0.4867, 0.4408)
CIFAR100_STD = (0.2675, 0.2565, 0.2761)
NUM_CLASSES = 100
N_PAD = 128  # NUM_CLASSES padded to a lane-dense 128-wide column tile.


def classify_kernel(x_ref, w_ref, b_ref, o_ref, acc_ref):
    """One K-tile of  logits = x @ W' + b'  (bf16 inputs, f32 accumulation)."""
    k = pl.program_id(0)

    @pl.when(k == 0)
    def _():
        acc_ref[...] = jnp.zeros_like(acc_ref)

    acc_ref[...] += jnp.dot(
        x_ref[...], w_ref[...], preferred_element_type=jnp.float32
    )

    @pl.when(k == pl.num_programs(0) - 1)
    def _():
        o_ref[...] = acc_ref[...] + b_ref[...]


def fold_normalization(w, b, hw):
    """Fold (x - mean) / std into the classifier weights / bias (exact reassociation)."""
    mean_vec = jnp.repeat(jnp.asarray(CIFAR100_MEAN, jnp.float32), hw)        # (K,)
    inv_std_vec = jnp.repeat(1.0 / jnp.asarray(CIFAR100_STD, jnp.float32), hw)  # (K,)
    w_folded = w * inv_std_vec[:, None]
    b_folded = b - (mean_vec * inv_std_vec) @ w
    return w_folded, b_folded


def prepare_params(w, b, hw, tk=512):
    """One-time weight prep: fold normalization, pad K to a tile multiple and N to 128,
    cast weights to bf16 (bias stays f32, added once at finalize)."""
    K = w.shape[0]
    w_f, b_f = fold_normalization(w.astype(jnp.float32), b.astype(jnp.float32), hw)
    K_pad = pl.cdiv(K, tk) * tk
    w_p = jnp.zeros((K_pad, N_PAD), jnp.float32).at[:K, :NUM_CLASSES].set(w_f)
    b_p = jnp.zeros((1, N_PAD), jnp.float32).at[0, :NUM_CLASSES].set(b_f)
    return w_p.astype(jnp.bfloat16), b_p


@functools.partial(jax.jit, static_argnames=("tk",))
def cifar100_forward(x_nchw, w_bf16, b_row, *, tk=512):
    """x_nchw: (B, 3, H, W) f32 in [0, 1];
    w_bf16: (K_pad, 128) folded bf16 weights; b_row: (1, 128) folded f32 bias.
    Returns (B, NUM_CLASSES) f32 logits."""
    B, C, H, W = x_nchw.shape
    K = C * H * W
    K_pad = w_bf16.shape[0]
    assert K_pad % tk == 0 and K_pad >= K

    # Flatten NCHW row-major (matches torch .view), pad K, cast to bf16.
    x_flat = x_nchw.reshape(B, K).astype(jnp.bfloat16)
    if K_pad != K:
        x_flat = jnp.pad(x_flat, ((0, 0), (0, K_pad - K)))

    out = pl.pallas_call(
        classify_kernel,
        out_shape=jax.ShapeDtypeStruct((B, N_PAD), jnp.float32),
        grid_spec=pltpu.PrefetchScalarGridSpec(
            num_scalar_prefetch=0,
            grid=(K_pad // tk,),  # reduction (K) axis only, last by construction
            in_specs=[
                pl.BlockSpec((B, tk), lambda k: (0, k)),        # activations (GEMV rows)
                pl.BlockSpec((tk, N_PAD), lambda k: (k, 0)),    # streamed weight tiles
                pl.BlockSpec((1, N_PAD), lambda k: (0, 0)),     # bias (resident)
            ],
            out_specs=pl.BlockSpec((B, N_PAD), lambda k: (0, 0)),
            scratch_shapes=[pltpu.VMEM((B, N_PAD), jnp.float32)],  # f32 accumulator
        ),
        compiler_params=pltpu.CompilerParams(
            dimension_semantics=("arbitrary",),          # K is a reduction axis
            vmem_limit_bytes=64 * 1024 * 1024,           # safe on v5e/v6e/v7x
        ),
    )(x_flat, w_bf16, b_row)
    return out[:, :NUM_CLASSES]


def reference_kernel_math(x_nchw, w_bf16, b_row):
    """Same math as the kernel (bf16 inputs, f32 accumulate) in plain JAX."""
    B, C, H, W = x_nchw.shape
    K = C * H * W
    K_pad = w_bf16.shape[0]
    x_flat = x_nchw.reshape(B, K).astype(jnp.bfloat16)
    if K_pad != K:
        x_flat = jnp.pad(x_flat, ((0, 0), (0, K_pad - K)))
    out = (
        jnp.dot(
            x_flat.astype(jnp.float32),
            w_bf16.astype(jnp.float32),
            preferred_element_type=jnp.float32,
        )
        + b_row
    )
    return out[:, :NUM_CLASSES]


def reference_forward_f32(x_nchw, w, b):
    """Original module semantics in full f32: normalize then classify."""
    B, C, H, W = x_nchw.shape
    mean = jnp.asarray(CIFAR100_MEAN, jnp.float32).reshape(1, C, 1, 1)
    std = jnp.asarray(CIFAR100_STD, jnp.float32).reshape(1, C, 1, 1)
    xn = (x_nchw - mean) / std
    return xn.reshape(B, C * H * W) @ w + b


if __name__ == "__main__":
    B, C, H, W = 2, 3, 16, 16
    K = C * H * W
    TK = 256  # divides K = 768 exactly -> 3 pipelined K steps, no padding

    key = jax.random.PRNGKey(0)
    k_x, k_w, k_b = jax.random.split(key, 3)

    # Deterministic example input (images in [0, 1], NCHW like PyTorch) and head params.
    x = jax.random.uniform(k_x, (B, C, H, W), dtype=jnp.float32)
    w = 0.02 * jax.random.normal(k_w, (K, NUM_CLASSES), dtype=jnp.float32)
    b = 0.01 * jax.random.normal(k_b, (NUM_CLASSES,), dtype=jnp.float32)

    # One-time (weight-load-time) folding / padding / casting.
    w_p, b_p = prepare_params(w, b, H * W, tk=TK)

    logits = jax.block_until_ready(cifar100_forward(x, w_p, b_p, tk=TK))

    # 1) Tight check: kernel vs identical bf16/f32-accum math in plain JAX.
    ref_bf16 = jax.block_until_ready(reference_kernel_math(x, w_p, b_p))
    # 2) Loose check: full-f32 original-module semantics (bf16 weights shift ~1e-3).
    ref_f32 = jax.block_until_ready(reference_forward_f32(x, w, b))

    assert logits.shape == (B, NUM_CLASSES)
    assert jnp.allclose(logits, ref_bf16, atol=1e-3, rtol=1e-3)
    assert jnp.allclose(logits, ref_f32, atol=3e-2)
    print("KERNEL_OK")
</pallas_src>

<mosaic_0001>
module attributes {stable_mosaic.version = 11 : i64} {
  func.func @classify_kernel(%arg0: i32, %arg1: memref<2x256xbf16, #tpu.memory_space<vmem>>, %arg2: memref<256x128xbf16, #tpu.memory_space<vmem>>, %arg3: memref<1x128xf32, #tpu.memory_space<vmem>>, %arg4: memref<2x128xf32, #tpu.memory_space<vmem>>, %arg5: memref<2x128xf32, #tpu.memory_space<vmem>>) attributes {dimension_semantics = [#tpu.dimension_semantics<arbitrary>], iteration_bounds = array<i64: 3>, scalar_prefetch = 0 : i64, scratch_operands = 1 : i64, tpu.core_type = #tpu.core_type<tc>, window_params = [{transform_indices = @transform_0, window_bounds = array<i64: 2, 256>}, {transform_indices = @transform_1, window_bounds = array<i64: 256, 128>}, {pipeline_mode = #tpu.pipeline_mode<synchronous>, transform_indices = @transform_2, window_bounds = array<i64: 1, 128>}, {pipeline_mode = #tpu.pipeline_mode<synchronous>, transform_indices = @transform_3, window_bounds = array<i64: 2, 128>}]} {
    %c0_i32 = arith.constant 0 : i32
    %0 = arith.cmpi eq, %arg0, %c0_i32 : i32
    %1 = arith.extui %0 : i1 to i32
    %c0_i32_0 = arith.constant 0 : i32
    %2 = arith.cmpi ne, %1, %c0_i32_0 : i32
    scf.if %2 {
      %cst_9 = arith.constant 0.000000e+00 : f32
      %12 = vector.broadcast %cst_9 : f32 to vector<2x128xf32>
      %c0_10 = arith.constant 0 : index
      %c0_11 = arith.constant 0 : index
      %13 = vector.load %arg5[%c0_10, %c0_11] : memref<2x128xf32, #tpu.memory_space<vmem>>, vector<2x128xf32>
      tpu.vector_store %arg5[%c0_10, %c0_11], %12 {strides = array<i32>} : memref<2x128xf32, #tpu.memory_space<vmem>>, vector<2x128xf32>,
    } else {
    }
    %c0 = arith.constant 0 : index
    %c0_1 = arith.constant 0 : index
    %3 = vector.load %arg5[%c0, %c0_1] : memref<2x128xf32, #tpu.memory_space<vmem>>, vector<2x128xf32>
    %c0_2 = arith.constant 0 : index
    %c0_3 = arith.constant 0 : index
    %4 = vector.load %arg1[%c0_2, %c0_3] : memref<2x256xbf16, #tpu.memory_space<vmem>>, vector<2x256xbf16>
    %c0_4 = arith.constant 0 : index
    %c0_5 = arith.constant 0 : index
    %5 = vector.load %arg2[%c0_4, %c0_5] : memref<256x128xbf16, #tpu.memory_space<vmem>>, vector<256x128xbf16>
    %cst = arith.constant dense<0.000000e+00> : vector<2x128xf32>
    %6 = tpu.matmul %4, %5, %cst {dimension_numbers = #tpu.dot_dimension_numbers<[1], [0], [0], [1], [0, 0, 1, 1], [], []>} : vector<2x256xbf16>, vector<256x128xbf16>, vector<2x128xf32> -> vector<2x128xf32>
    %7 = arith.addf %3, %6 : vector<2x128xf32>
    %c0_6 = arith.constant 0 : index
    %c0_7 = arith.constant 0 : index
    %8 = vector.load %arg5[%c0_6, %c0_7] : memref<2x128xf32, #tpu.memory_space<vmem>>, vector<2x128xf32>
    tpu.vector_store %arg5[%c0_6, %c0_7], %7 {strides = array<i32>} : memref<2x128xf32, #tpu.memory_space<vmem>>, vector<2x128xf32>,
    %c2_i32 = arith.constant 2 : i32
    %9 = arith.cmpi eq, %arg0, %c2_i32 : i32
    %10 = arith.extui %9 : i1 to i32
    %c0_i32_8 = arith.constant 0 : i32
    %11 = arith.cmpi ne, %10, %c0_i32_8 : i32
    scf.if %11 {
      %c0_9 = arith.constant 0 : index
      %c0_10 = arith.constant 0 : index
      %12 = vector.load %arg5[%c0_9, %c0_10] : memref<2x128xf32, #tpu.memory_space<vmem>>, vector<2x128xf32>
      %c0_11 = arith.constant 0 : index
      %c0_12 = arith.constant 0 : index
      %13 = vector.load %arg3[%c0_11, %c0_12] : memref<1x128xf32, #tpu.memory_space<vmem>>, vector<1x128xf32>
      %14 = vector.broadcast %13 : vector<1x128xf32> to vector<2x128xf32>
      %15 = arith.addf %12, %14 : vector<2x128xf32>
      %c0_13 = arith.constant 0 : index
      %c0_14 = arith.constant 0 : index
      %16 = vector.load %arg4[%c0_13, %c0_14] : memref<2x128xf32, #tpu.memory_space<vmem>>, vector<2x128xf32>
      tpu.vector_store %arg4[%c0_13, %c0_14], %15 {strides = array<i32>} : memref<2x128xf32, #tpu.memory_space<vmem>>, vector<2x128xf32>,
    } else {
    }
    return
  }
  func.func @transform_0(%arg0: i32) -> (i32, i32) {
    %c0_i32 = arith.constant 0 : i32
    %c0_i32_0 = arith.constant 0 : i32
    return %c0_i32, %arg0 : i32, i32
  }
  func.func @transform_1(%arg0: i32) -> (i32, i32) {
    %c0_i32 = arith.constant 0 : i32
    %c0_i32_0 = arith.constant 0 : i32
    return %arg0, %c0_i32 : i32, i32
  }
  func.func @transform_2(%arg0: i32) -> (i32, i32) {
    %c0_i32 = arith.constant 0 : i32
    %c0_i32_0 = arith.constant 0 : i32
    %c0_i32_1 = arith.constant 0 : i32
    return %c0_i32, %c0_i32_0 : i32, i32
  }
  func.func @transform_3(%arg0: i32) -> (i32, i32) {
    %c0_i32 = arith.constant 0 : i32
    %c0_i32_0 = arith.constant 0 : i32
    %c0_i32_1 = arith.constant 0 : i32
    return %c0_i32, %c0_i32_0 : i32, i32
  }
}

</mosaic_0001>

<bundles_post_ra>
// kernel: cifar100_forward.1
= control target key start
LH: loop header
LB: loop body
LE: loop exit
PB: predicated region body
PF: predicated region fallthrough
CT: control target
= control target key end

     0   :  { %8 = vsyncpa [#allocation4], 0  ;;  %s833_s0 = inlined_call_operand.vmem [shape: bf16[2,768], index: 0, kind: input, shape index: {}]   ;;  %s834_s1 = inlined_call_operand.hbm [shape: bf16[768,128], index: 1, kind: input, shape index: {}]   ;;  %s835_s2 = inlined_call_operand.vmem [shape: f32[1,128], index: 2, kind: input, shape index: {}]   ;;  %s836_s3 = inlined_call_operand.hbm [shape: f32[2,128], index: 3, kind: output, shape index: {}]  }
   0x1   :  { %10 = vsyncpa [#allocation4 + $0x1], 0 }
   0x2   :  { %11 = vsyncpa [#allocation5], 0  ;;  %s715_s12 = smov 0   ;;  %s717_s13 = smov 0  }
   0x3   :  { %s719_s14 = smov 0   ;;  %s721_s15 = smov 0  }
   0x4 LB: > { %s734_s16 = sadd.s32 4294967295, %s689_s15   ;;  %s737_s17 = sadd.s32 1, %s689_s15   ;;  %s689_s15 = sphi %s721_s15, %s843_s15   ;;  %s685_s14 = sphi %s719_s14, %s842_s14   ;;  %s681_s13 = sphi %s717_s13, %s841_s13   ;;  %s677_s12 = sphi %s715_s12, %s840_s12  }
   0x5   : > { %s47_s18 = ssub.s32 %s689_s15, %s737_s17  ;;  %s50_s19 = sadd.s32 1, %s685_s14 }
   0x6   : > { %p48_p0 = scmp.eq.s32.totalorder %s47_s18, 0  ;;  %p57_p1 = scmp.ne.s32.totalorder %s685_s14, %s681_s13 }
   0x7   : > { %p58_p2 = scmp.eq.s32.totalorder %s689_s15, 0  ;;  %p63_p3 = scmp.ne.s32.totalorder %s681_s13, %s677_s12 }
   0x8   : > { %s747_s20 = scalar_select %p48_p0, %s685_s14, %s50_s19  }
   0x9   : > { %p749_p4 = por %p58_p2, %p57_p1  ;;  %p64_p5 = scmp.eq.s32.totalorder %s734_s16, 0 }
   0xa   : > { %p553_p6 = scmp.lt.s32.totalorder %s689_s15, 3  ;;  %s140_s23 = sand.u32 1, %s685_s14  }
   0xb   : > { %p755_p7 = por %p64_p5, %p63_p3  ;;  %s450_s24 = sshll.u32 %s140_s23, 7 }
   0xc   : > { %s526_s25 = sshll.u32 %s689_s15, 7  ;;  %s144_s29 = scalar_lea.vmem [#allocation3], %s450_s24 }
   0xd   : > { %s149_s28 = scalar_lea.hbm %s834_s1, %s526_s25  ;;  %s152_s30 = sshll.u32 %s144_s29, 4  ;;  %s153_s30 = int_to_ptr.vmem [resolvable:$true] %s152_s30 }
   0xe   : > { %s150_s4 = sshll.u32 %s149_s28, 4  ;;  %p766_p8 = pnand %p553_p6, %p749_p4  ;;  %s151_s4 = int_to_ptr.hbm [resolvable:$true] %s150_s4 }
   0xf   : > { %p453_p9 = scmp.ge.s32.totalorder %s689_s15, 1  ;;  %s141_s6 = scalar_lea.sflag [#allocation4], %s140_s23 }
  0x10   : > { %s593_s7 = sshra.s32 %s151_s4, 4  ;;  %p597_p11 = pneg %p766_p8  ;;  %s594_s7 = int_to_ptr.hbm [resolvable:$true] %s593_s7 }
  0x11   : > { %s595_s8 = scalar_lea.hbm %s594_s7, 128  ;;  %s600_s11 = scalar_lea.hbm %s834_s1, 384 }
  0x12   : > { %p596_p10 = scmp.ne.s32.totalorder %s594_s7, %s595_s8  ;;  %p601_p0 = scmp.lt.s32.totalorder %s594_s7, %s834_s1 }
  0x13   : > { %p602_p1 = scmp.lt.s32.totalorder %s600_s11, %s595_s8 }
  0x14   : > { %p598_p12 = pnand %p597_p11, %p596_p10 }
  0x15   : > { %p603_p2 = por %p602_p1, %p601_p0 }
  0x16   : > { %p599_p13 = pneg %p598_p12 }
  0x18   : > { %p604_p3 = pnand %p603_p2, %p599_p13 }
  0x1a   : > { %607 = shalt.err (!%p604_p3)
}
  0x1b   : > { %s691_s19 = smov 64   ;;  %s692_s21 = smov 4  }
  0x1c   : > { %552 = dma.hbm_to_vmem [thread:$0]  (!%p766_p8), %s151_s4, 2048, %s153_s30, %s141_s6, %s691_s19, %s691_s19, %s692_s21  }
  0x1d   : > { %p160_p4 = scmp.lt.s32.totalorder %s689_s15, 4 }
  0x1f   : > { %p161_p5 = pnand %p453_p9, %p160_p4 }
  0x20   : > { %s166_s23 = sand.u32 (!%p161_p5), 1, %s681_s13  }
  0x21   : > { %164 = sbr.rel (%p161_p5) target bundleno = 227 (0xe3), region = 32  ;;  %s454_s24 = sshll.u32 (!%p161_p5), %s166_s23, 7 }
  0x22   : > { %s167_s25 = scalar_lea.sflag (!%p161_p5), [#allocation4], %s166_s23  ;;  %s785_s26 = scalar_lea.vmem (!%p161_p5), [#allocation3], %s454_s24 }
  0x26   : > { %668 = dma.done.wait (%p755_p7), %s167_s25, 2048  }
  0x27   : > { %670 = vsyncadd (%p755_p7), %s167_s25, 4294965248  ;;  %s455_s27 = sshll.u32 %s734_s16, 1  ;;  %p456_p8 = scmp.ne.s32.totalorder %s734_s16, 0 }
  0x28   : > { %p194_p6 = scmp.lt.s32.totalorder %s455_s27, 5 }
  0x29   : > { %202 = sbr.rel (%p456_p8) target bundleno = 48 (0x30), region = 40 }
  0x2a   : > { %s845_s27 = smov (!%p194_p6, %s455_s27), 5 }
  0x2b   : > { %s196_s29 = scalar_lea.vmem %s833_s0, %s845_s27 }
  0x2e   : > { %v693_v0 = vmov 0.0  }
  0x2f   : > { %203 = vst [vmem:[#allocation2] sm:$0x3] %v693_v0 }
  0x30 PF: > { %v534_v1 = vld [vmem:[%s785_s26 + $0x38] sm:$0xff]  ;;  %v533_v3 = vld [vmem:[%s785_s26 + $0x30] sm:$0xff]  ;;  %v532_v6 = vld [vmem:[%s785_s26 + $0x28] sm:$0xff]  ;;  %p521_p7 = scmp.ne.s32.totalorder %s734_s16, 2 }
  0x31   : > { %v542_v2 = vld [vmem:[%s785_s26 + $0x78] sm:$0xff]  ;;  %340 = vmatpush.bf16.msra.mxu0 %v534_v1  ;;  %v541_v4 = vld [vmem:[%s785_s26 + $0x70] sm:$0xff]  ;;  %v540_v7 = vld [vmem:[%s785_s26 + $0x68] sm:$0xff] }
  0x32   : > { %353 = vmatpush.bf16.msra.mxu1 %v542_v2  ;;  %v205_v5 = vld [vmem:[%s196_s29] sm:$0x3]  ;;  %v531_v8 = vld [vmem:[%s785_s26 + $0x20] sm:$0xff]  ;;  %v530_v10 = vld [vmem:[%s785_s26 + $0x18] sm:$0xff] }
  0x33   : > { %239 = vst [vmem:[#allocation1] ss:$9 sm:$0xff] %v205_v5  ;;  %v539_v9 = vld [vmem:[%s785_s26 + $0x60] sm:$0xff]  ;;  %v538_v11 = vld [vmem:[%s785_s26 + $0x58] sm:$0xff]  ;;  %v529_v12 = vld [vmem:[%s785_s26 + $0x10] sm:$0xff] }
  0x34   : > { %v537_v13 = vld [vmem:[%s785_s26 + $0x50] sm:$0xff]  ;;  %v528_v14 = vld [vmem:[%s785_s26 + $0x8] sm:$0xff]  ;;  %v527_v16 = vld [vmem:[%s785_s26] sm:$0xff] }
  0x35   : > { %341 = vmatpush.bf16.msra.mxu0 %v533_v3  ;;  %v536_v15 = vld [vmem:[%s785_s26 + $0x48] sm:$0xff]  ;;  %v535_v17 = vld [vmem:[%s785_s26 + $0x40] sm:$0xff] }
  0x36   : > { %354 = vmatpush.bf16.msra.mxu1 %v541_v4  ;;  %v204_v21 = vld [vmem:[#allocation2] sm:$0x3] }
  0x39   : > { %342 = vmatpush.bf16.msra.mxu0 %v532_v6 }
  0x3a   : > { %355 = vmatpush.bf16.msra.mxu1 %v540_v7  ;;  %v240_v18 = vld [vmem:[#allocation1] sm:$0xff]  ;;  %v241_v19 = vld [vmem:[#allocation1 + $0x9] sm:$0xff] }
  0x3d   : > { %343 = vmatpush.bf16.msra.mxu0 %v531_v8 }
  0x3e   : > { %356 = vmatpush.bf16.msra.mxu1 %v539_v9 }
  0x41   : > { %344 = vmatpush.bf16.msra.mxu0 %v530_v10 }
  0x42   : > { %357 = vmatpush.bf16.msra.mxu1 %v538_v11 }
  0x45   : > { %345 = vmatpush.bf16.msra.mxu0 %v529_v12 }
  0x46   : > { %358 = vmatpush.bf16.msra.mxu1 %v537_v13 }
  0x49   : > { %346 = vmatpush.bf16.msra.mxu0 %v528_v14 }
  0x4a   : > { %359 = vmatpush.bf16.msra.mxu1 %v536_v15 }
  0x4d   : > { %347 = vmatpush.bf16.msra.mxu0 %v527_v16 }
  0x4e   : > { %360 = vmatpush.bf16.msra.mxu1 %v535_v17 }
  0x50   : > { %348 = vmatmul.bf16.vlgmr.msra.gmra.mxu0 %v240_v18 }
  0x51   : > { %361 = vmatmul.bf16.vlgmr.msra.gmra.mxu1 %v241_v19 }
  0xcd   : > { %v349_v20 = vpop.f32.mrf.mxu0 }
  0xce   : > { %v362_v22 = vpop.f32.mrf.mxu1 }
  0xcf   : > { %v363_v23 = vadd.f32 %v362_v22, %v349_v20 }
  0xd1   : > { %v366_v24 = vadd.f32 %v363_v23, %v204_v21 }
  0xd2   : > { %371 = sbr.rel (%p521_p7) target bundleno = 222 (0xde), region = 44 }
  0xd3   : > { %367 = vst [vmem:[#allocation2] sm:$0x3] %v366_v24 }
  0xd5   : > { %v351_v25 = vpop.f32.mrf.mxu0 }
  0xd6   : > { %v364_v26 = vpop.f32.mrf.mxu1 }
  0xd7   : > { %v592_v28 = vld [vmem:[%s835_s2] ss:$0 sm:$0xff] }
  0xda   : > { %v372_v27 = vld [vmem:[#allocation2] sm:$0x3] }
  0xdb   : > { %v377_v29 = vadd.f32 %v592_v28, %v372_v27 }
  0xdd   : > { %378 = vst [vmem:[#allocation6] sm:$0x3] %v377_v29 }
  0xde PF: > { %p554_p9 = scmp.eq.s32.totalorder %s734_s16, 2  ;;  %s694_s4 = smov [#allocation6]  }
  0xdf   : > { %s385_s5 = sshll.u32 %s694_s4, 4  ;;  %s387_s8 = sshll.u32 %s836_s3, 4  ;;  %s386_s5 = int_to_ptr.vmem [resolvable:$true] %s385_s5  ;;  %s388_s8 = int_to_ptr.hbm [resolvable:$true] %s387_s8 }
  0xe0   : > { %546 = dma.vmem_to_hbm [thread:$0]  (%p554_p9), %s386_s5, 32, %s388_s8, [#allocation5]  }
  0xe1   : > { %672 = dma.done.wait (%p554_p9), [#allocation5], 32  }
  0xe2   : > { %674 = vsyncadd (%p554_p9), [#allocation5], 4294967264 }
  0xe3 PF: > { %p14_p10 = scmp.ge.s32.totalorder %s737_s17, 5   ;;  %s840_s12 = smov %s681_s13 }
  0xe4   : > { %s841_s13 = smov %s685_s14  ;;  %s842_s14 = smov %s747_s20 }
  0xe5   : > { %s843_s15 = smov %s737_s17  ;;  %16 = sbr.rel (!%p14_p10) target bundleno = 4 (0x4), region = 80 }
  0xea   :  { %401 = vsyncpa [#allocation4], 1 }
  0xeb   :  { %403 = vsyncpa [#allocation4 + $0x1], 1 }
  0xec   :  { %404 = vsyncpa [#allocation5], 1 }
  0xed   :  { %406 = vsyncpa [#allocation5 + $0x1], 1 }

</bundles_post_ra>
